<compile_context>
chip_gen: v7x
topology: tpu7x:2x2x1
jax: 0.10.0
libtpu: 0.0.40
codegen_flags: <defaults>
</compile_context>

<pallas_src>
from collections import OrderedDict
from typing import Optional, Union, Dict

import functools

import numpy as np
import jax
import jax.numpy as jnp
from jax.experimental import pallas as pl
from jax.experimental.pallas import tpu as pltpu


def _cyclic_lane_shift(x: jax.Array, s: int) -> jax.Array:
    """result[..., p] = x[..., (p + s) % L] for a static shift s.

    Written as an explicit concatenate of two static lane slices so the shift
    direction is unambiguous (pltpu.roll(x, -s, axis=-1) is the XLU-native
    equivalent)."""
    L = x.shape[-1]
    s = s % L
    if s == 0:
        return x
    return jnp.concatenate([x[..., s:], x[..., :s]], axis=-1)


def _conv2d_hwlane_kernel(x_ref, w_ref, b_ref, m_ref, o_ref, col_ref, *,
                          B, H, W, Cin, Cout, KH, KW, K, K_pad,
                          pad_h, pad_w, compute_dtype):
    """Stride-1 same-padding conv for one batch tile, NCHW-native.

    x_ref  : (B, Cin, H*W)         input tile, flattened spatial on lanes
    w_ref  : (Cout, K_pad)         weight matrix, k = (kh*KW + kw)*Cin + ci
    b_ref  : (Cout, 1)             bias column (f32)
    m_ref  : (KH*KW, 1, H*W)       per-tap 0/1 boundary masks (compute dtype)
    o_ref  : (B, Cout, H*W)        output tile
    col_ref: (K_pad, B*H*W)        im2col scratch (compute dtype)
    """
    HW = H * W
    cdt = jnp.dtype(compute_dtype)

    # 1) Build the im2col slab: one masked cyclic lane-shift per (image, tap).
    #    Every logical row/column of col_ref is overwritten each grid step.
    for b in range(B):                       # static unroll; B_TILE is small
        x_b = x_ref[b]                       # (Cin, HW)
        if x_b.dtype != cdt:
            x_b = x_b.astype(cdt)            # single cast per image
        for kh in range(KH):
            for kw in range(KW):
                t = kh * KW + kw
                s = (kh - pad_h) * W + (kw - pad_w)
                shifted = _cyclic_lane_shift(x_b, s)        # (Cin, HW)
                # The mask zeroes out-of-image taps, including every element
                # whose cyclic shift wrapped across an image boundary.
                col_ref[pl.ds(t * Cin, Cin), pl.ds(b * HW, HW)] = (
                    shifted * m_ref[t])

    # Alignment-pad rows of the im2col slab must be zero every step (scratch
    # persists across steps and per-core under "parallel" semantics, so we
    # never gate this on program_id == 0).
    if K_pad > K:
        col_ref[pl.ds(K, K_pad - K), :] = jnp.zeros((K_pad - K, B * HW), cdt)

    # 2) One MXU matmul for the whole tile: (Cout, K_pad) @ (K_pad, B*HW),
    #    accumulated in f32.
    res = jnp.dot(w_ref[...], col_ref[...],
                  preferred_element_type=jnp.float32)
    res = res + b_ref[...]                   # bias, broadcast over lanes

    # 3) Lane-dense (HW multiple of 128 -> unmasked vst) stores back into the
    #    NCHW-flattened output tile.
    for b in range(B):
        o_ref[b] = res[:, b * HW:(b + 1) * HW].astype(o_ref.dtype)


def _build_tap_masks(H, W, KH, KW, pad_h, pad_w, dtype) -> jax.Array:
    """(KH*KW, 1, H*W) 0/1 masks: mask[t, 0, h*W+w] = 1 iff the tap's source
    pixel (h + kh - pad_h, w + kw - pad_w) lies inside the image."""
    hh = np.arange(H).reshape(H, 1)
    ww = np.arange(W).reshape(1, W)
    masks = np.zeros((KH * KW, 1, H * W), np.float32)
    for kh in range(KH):
        for kw in range(KW):
            dh, dw = kh - pad_h, kw - pad_w
            valid = ((hh + dh >= 0) & (hh + dh < H) &
                     (ww + dw >= 0) & (ww + dw < W))
            masks[kh * KW + kw, 0, :] = valid.reshape(-1).astype(np.float32)
    return jnp.asarray(masks, dtype=dtype)


def _num_tensorcores_per_chip() -> int:
    """Best-effort: v7x exposes 2 TensorCores per chip; v5e/v6e have 1."""
    try:
        kind = jax.devices()[0].device_kind.lower()
    except Exception:
        return 1
    return 2 if ("7x" in kind or "v7" in kind) else 1


def _pick_batch_tile(n: int, per_image_bytes: int, fixed_bytes: int,
                     budget_bytes: int, max_tile: int, num_tc: int) -> int:
    """Largest divisor of n whose pipelined VMEM footprint fits the budget.
    On 2-TC chips prefer tiles that keep the grid an even number of equal
    blocks so both cores stay balanced; on 1-TC chips just take the largest
    fitting tile (no >= 2 block rule)."""
    divisors = [d for d in range(1, min(n, max_tile) + 1) if n % d == 0]
    fits = [d for d in divisors
            if fixed_bytes + d * per_image_bytes <= budget_bytes]
    if not fits:
        return 1
    if num_tc >= 2 and n >= 2:
        balanced = [d for d in fits if (n // d) % 2 == 0]
        if balanced:
            return max(balanced)
    return max(fits)


class PallasConv2d:
    """Stride-1 'same' Conv2d (NCHW in / NCHW out) with a Pallas TPU kernel."""

    _VMEM_BUDGET = 24 * 1024 * 1024   # conservative across v5e/v6e/v7x
    _VMEM_LIMIT = 32 * 1024 * 1024    # raises v5e's 16 MiB scoped default
    _MAX_BATCH_TILE = 8               # bounds static unroll of the b loop

    def __init__(self, in_channels: int, out_channels: int,
                 kernel_size: int = 3, padding: int = 1,
                 key: Optional[jax.Array] = None,
                 compute_dtype=jnp.bfloat16):
        assert 2 * padding == kernel_size - 1, "stride-1 'same' conv only"
        self.in_channels = in_channels
        self.out_channels = out_channels
        self.kernel_size = kernel_size
        self.padding = padding
        # bf16 operands + f32 accumulation is MXU-native on v5e/v6e/v7x; pass
        # compute_dtype=jnp.float32 for bit-tight numerics vs an f32 reference.
        self.compute_dtype = compute_dtype
        if key is None:
            key = jax.random.PRNGKey(0)
        k_w, k_b = jax.random.split(key)
        fan_in = in_channels * kernel_size * kernel_size
        bound = 1.0 / (fan_in ** 0.5)
        # PyTorch-native OIHW weight layout; used directly every call (no
        # weight-derived cache, so parameter updates can never go stale).
        self.weight = jax.random.uniform(
            k_w, (out_channels, in_channels, kernel_size, kernel_size),
            jnp.float32, minval=-bound, maxval=bound)
        self.bias = jax.random.uniform(
            k_b, (out_channels,), jnp.float32, minval=-bound, maxval=bound)
        # Masks depend on shape only (never on weights) -> safe to cache.
        self._mask_cache = {}

    def _masks(self, H: int, W: int) -> jax.Array:
        key = (H, W, jnp.dtype(self.compute_dtype).name)
        m = self._mask_cache.get(key)
        if m is None:
            m = _build_tap_masks(H, W, self.kernel_size, self.kernel_size,
                                 self.padding, self.padding,
                                 self.compute_dtype)
            self._mask_cache[key] = m
        return m

    def _xla_fallback(self, x_nchw: jax.Array) -> jax.Array:
        y = jax.lax.conv_general_dilated(
            x_nchw, self.weight, window_strides=(1, 1),
            padding=((self.padding,) * 2, (self.padding,) * 2),
            dimension_numbers=('NCHW', 'OIHW', 'NCHW'))
        return y + self.bias.reshape(1, -1, 1, 1)

    def __call__(self, x_nchw: jax.Array) -> jax.Array:
        N, Cin, H, W = x_nchw.shape
        assert Cin == self.in_channels
        KH = KW = self.kernel_size
        pad = self.padding
        Cout = self.out_channels
        HW = H * W
        K = Cin * KH * KW
        K_pad = ((K + 15) // 16) * 16          # sublane-friendly contraction
        cdt = jnp.dtype(self.compute_dtype)
        csize = cdt.itemsize
        out_dtype = x_nchw.dtype
        xsize = x_nchw.dtype.itemsize

        # Lane-density guard: the kernel keeps H*W on the 128-wide lane axis.
        if HW % 128 != 0:
            # TODO(synk): pad H*W up to a lane multiple inside the kernel
            # instead of falling back to XLA for odd spatial sizes.
            return self._xla_fallback(x_nchw)

        # Free views only -- no NCHW<->NHWC transposes, no extra HBM pass.
        x_flat = x_nchw.reshape(N, Cin, HW)
        # Weight as (Cout, K_pad) with k = (kh*KW + kw)*Cin + ci; cast once.
        w_mat = jnp.transpose(self.weight, (0, 2, 3, 1)).reshape(Cout, K)
        w_mat = jnp.pad(w_mat, ((0, 0), (0, K_pad - K))).astype(cdt)
        bias_col = self.bias.reshape(Cout, 1).astype(jnp.float32)
        masks = self._masks(H, W)                      # (KH*KW, 1, HW)

        # VMEM-aware batch tile: 2x-buffered input + output blocks plus the
        # im2col scratch per image, small fixed cost for weight/bias/masks.
        per_image = (2 * Cin * HW * xsize
                     + 2 * Cout * HW * out_dtype.itemsize
                     + K_pad * HW * csize)
        fixed = 2 * (w_mat.size * csize + masks.size * csize
                     + bias_col.size * 4)
        b_tile = _pick_batch_tile(N, per_image, fixed, self._VMEM_BUDGET,
                                  self._MAX_BATCH_TILE,
                                  _num_tensorcores_per_chip())
        grid = (N // b_tile,)

        kernel = functools.partial(
            _conv2d_hwlane_kernel, B=b_tile, H=H, W=W, Cin=Cin, Cout=Cout,
            KH=KH, KW=KW, K=K, K_pad=K_pad, pad_h=pad, pad_w=pad,
            compute_dtype=self.compute_dtype)

        flops = 2 * N * H * W * KH * KW * Cin * Cout
        bytes_accessed = (x_flat.size * xsize
                          + N * Cout * HW * out_dtype.itemsize
                          + w_mat.size * csize + masks.size * csize
                          + bias_col.size * 4)

        y_flat = pl.pallas_call(
            kernel,
            out_shape=jax.ShapeDtypeStruct((N, Cout, HW), out_dtype),
            grid_spec=pltpu.PrefetchScalarGridSpec(
                num_scalar_prefetch=0,
                grid=grid,
                in_specs=[
                    pl.BlockSpec((b_tile, Cin, HW), lambda n: (n, 0, 0)),
                    # grid-invariant operands (tiny; default buffering is fine)
                    pl.BlockSpec((Cout, K_pad), lambda n: (0, 0)),
                    pl.BlockSpec((Cout, 1), lambda n: (0, 0)),
                    pl.BlockSpec((KH * KW, 1, HW), lambda n: (0, 0, 0)),
                ],
                out_specs=pl.BlockSpec((b_tile, Cout, HW),
                                       lambda n: (n, 0, 0)),
                scratch_shapes=[
                    pltpu.VMEM((K_pad, b_tile * HW), self.compute_dtype)],
            ),
            compiler_params=pltpu.CompilerParams(
                dimension_semantics=("parallel",),
                vmem_limit_bytes=self._VMEM_LIMIT),
            cost_estimate=pl.CostEstimate(
                flops=flops, transcendentals=0,
                bytes_accessed=bytes_accessed),
        )(x_flat, w_mat, bias_col, masks)

        # Free view back to NCHW.
        return y_flat.reshape(N, Cout, H, W)


class Pack:
    """JAX mirror of the PyTorch Pack module (host-side plumbing only)."""

    def __init__(self, body, in_feat_name: Optional[str] = None,
                 output_both_ends: bool = False):
        self.body = body
        self.in_feat_name = in_feat_name
        if output_both_ends:
            self.out_feat_names = ['head_input', 'head_output']
            self.out_channels_list = [body.in_channels, body.out_channels]
        else:
            self.out_channels = body.out_channels

    def __call__(self, x: Union[jax.Array, Dict[str, jax.Array]]):
        x = x[self.in_feat_name] if self.in_feat_name is not None else x
        y = self.body(x)
        if hasattr(self, 'out_feat_names'):
            return OrderedDict([(self.out_feat_names[0], x),
                                (self.out_feat_names[1], y)])
        return y


if __name__ == "__main__":
    key = jax.random.PRNGKey(0)
    k_x, k_body = jax.random.split(key)

    N, Cin, H, W = 2, 4, 16, 16
    Cout = 8
    x = jax.random.normal(k_x, (N, Cin, H, W), jnp.float32)

    # XLA reference conv (f32, highest precision).
    body_f32 = PallasConv2d(Cin, Cout, kernel_size=3, padding=1, key=k_body,
                            compute_dtype=jnp.float32)
    y_ref = jax.lax.conv_general_dilated(
        x, body_f32.weight, window_strides=(1, 1), padding=((1, 1), (1, 1)),
        dimension_numbers=('NCHW', 'OIHW', 'NCHW'),
        precision=jax.lax.Precision.HIGHEST)
    y_ref = y_ref + body_f32.bias.reshape(1, Cout, 1, 1)

    # --- f32 compute path: plain Pack, tight numerical check ----------------
    pack = Pack(body_f32)
    y = jax.block_until_ready(pack(x))
    assert y.shape == (N, Cout, H, W)
    assert jnp.allclose(y, y_ref, rtol=1e-4, atol=1e-4), \
        float(jnp.max(jnp.abs(y - y_ref)))

    # --- default bf16-operand path (MXU-native), dict-in / dict-out Pack ----
    body_bf16 = PallasConv2d(Cin, Cout, kernel_size=3, padding=1, key=k_body)
    pack2 = Pack(body_bf16, in_feat_name='feat', output_both_ends=True)
    out = jax.block_until_ready(pack2({'feat': x}))
    assert list(out.keys()) == ['head_input', 'head_output']
    assert out['head_input'].shape == (N, Cin, H, W)
    assert out['head_output'].shape == (N, Cout, H, W)
    # bf16 operands with f32 accumulation -> loose tolerance vs f32 reference.
    assert float(jnp.max(jnp.abs(out['head_output'] - y_ref))) < 0.1

    print("KERNEL_OK")
</pallas_src>

<mosaic_0001>
module attributes {stable_mosaic.version = 11 : i64} {
  func.func @_conv2d_hwlane_kernel(%arg0: i32, %arg1: memref<2x4x256xf32, #tpu.memory_space<vmem>>, %arg2: memref<8x48xf32, #tpu.memory_space<vmem>>, %arg3: memref<8x1xf32, #tpu.memory_space<vmem>>, %arg4: memref<9x1x256xf32, #tpu.memory_space<vmem>>, %arg5: memref<2x8x256xf32, #tpu.memory_space<vmem>>, %arg6: memref<48x512xf32, #tpu.memory_space<vmem>>) attributes {dimension_semantics = [#tpu.dimension_semantics<parallel>], iteration_bounds = array<i64: 1>, scalar_prefetch = 0 : i64, scratch_operands = 1 : i64, tpu.core_type = #tpu.core_type<tc>, window_params = [{transform_indices = @transform_0, window_bounds = array<i64: 2, 4, 256>}, {pipeline_mode = #tpu.pipeline_mode<synchronous>, transform_indices = @transform_1, window_bounds = array<i64: 8, 48>}, {pipeline_mode = #tpu.pipeline_mode<synchronous>, transform_indices = @transform_2, window_bounds = array<i64: 8, 1>}, {pipeline_mode = #tpu.pipeline_mode<synchronous>, transform_indices = @transform_3, window_bounds = array<i64: 9, 1, 256>}, {transform_indices = @transform_4, window_bounds = array<i64: 2, 8, 256>}]} {
    %c0 = arith.constant 0 : index
    %c0_0 = arith.constant 0 : index
    %c0_1 = arith.constant 0 : index
    %0 = vector.load %arg1[%c0, %c0_0, %c0_1] : memref<2x4x256xf32, #tpu.memory_space<vmem>>, vector<1x4x256xf32>
    %1 = vector.shape_cast %0 : vector<1x4x256xf32> to vector<4x256xf32>
    %2 = vector.extract_strided_slice %1 {offsets = [0, 239], sizes = [4, 17], strides = [1, 1]} : vector<4x256xf32> to vector<4x17xf32>
    %3 = vector.extract_strided_slice %1 {offsets = [0, 0], sizes = [4, 239], strides = [1, 1]} : vector<4x256xf32> to vector<4x239xf32>
    %4 = tpu.concatenate %2, %3 in 1 : vector<4x17xf32>, vector<4x239xf32> -> vector<4x256xf32>
    %c0_2 = arith.constant 0 : index
    %c0_3 = arith.constant 0 : index
    %c0_4 = arith.constant 0 : index
    %5 = vector.load %arg4[%c0_2, %c0_3, %c0_4] : memref<9x1x256xf32, #tpu.memory_space<vmem>>, vector<1x1x256xf32>
    %6 = vector.shape_cast %5 : vector<1x1x256xf32> to vector<1x256xf32>
    %7 = vector.broadcast %6 : vector<1x256xf32> to vector<4x256xf32>
    %8 = arith.mulf %4, %7 : vector<4x256xf32>
    %c0_5 = arith.constant 0 : index
    %c0_6 = arith.constant 0 : index
    %9 = vector.load %arg6[%c0_5, %c0_6] : memref<48x512xf32, #tpu.memory_space<vmem>>, vector<4x256xf32>
    tpu.vector_store %arg6[%c0_5, %c0_6], %8 {strides = array<i32>} : memref<48x512xf32, #tpu.memory_space<vmem>>, vector<4x256xf32>,
    %10 = vector.extract_strided_slice %1 {offsets = [0, 240], sizes = [4, 16], strides = [1, 1]} : vector<4x256xf32> to vector<4x16xf32>
    %11 = vector.extract_strided_slice %1 {offsets = [0, 0], sizes = [4, 240], strides = [1, 1]} : vector<4x256xf32> to vector<4x240xf32>
    %12 = tpu.concatenate %10, %11 in 1 : vector<4x16xf32>, vector<4x240xf32> -> vector<4x256xf32>
    %c1 = arith.constant 1 : index
    %c0_7 = arith.constant 0 : index
    %c0_8 = arith.constant 0 : index
    %13 = vector.load %arg4[%c1, %c0_7, %c0_8] : memref<9x1x256xf32, #tpu.memory_space<vmem>>, vector<1x1x256xf32>
    %14 = vector.shape_cast %13 : vector<1x1x256xf32> to vector<1x256xf32>
    %15 = vector.broadcast %14 : vector<1x256xf32> to vector<4x256xf32>
    %16 = arith.mulf %12, %15 : vector<4x256xf32>
    %c4 = arith.constant 4 : index
    %c0_9 = arith.constant 0 : index
    %17 = vector.load %arg6[%c4, %c0_9] : memref<48x512xf32, #tpu.memory_space<vmem>>, vector<4x256xf32>
    tpu.vector_store %arg6[%c4, %c0_9], %16 {strides = array<i32>} : memref<48x512xf32, #tpu.memory_space<vmem>>, vector<4x256xf32>,
    %18 = vector.extract_strided_slice %1 {offsets = [0, 241], sizes = [4, 15], strides = [1, 1]} : vector<4x256xf32> to vector<4x15xf32>
    %19 = vector.extract_strided_slice %1 {offsets = [0, 0], sizes = [4, 241], strides = [1, 1]} : vector<4x256xf32> to vector<4x241xf32>
    %20 = tpu.concatenate %18, %19 in 1 : vector<4x15xf32>, vector<4x241xf32> -> vector<4x256xf32>
    %c2 = arith.constant 2 : index
    %c0_10 = arith.constant 0 : index
    %c0_11 = arith.constant 0 : index
    %21 = vector.load %arg4[%c2, %c0_10, %c0_11] : memref<9x1x256xf32, #tpu.memory_space<vmem>>, vector<1x1x256xf32>
    %22 = vector.shape_cast %21 : vector<1x1x256xf32> to vector<1x256xf32>
    %23 = vector.broadcast %22 : vector<1x256xf32> to vector<4x256xf32>
    %24 = arith.mulf %20, %23 : vector<4x256xf32>
    %c8 = arith.constant 8 : index
    %c0_12 = arith.constant 0 : index
    %25 = vector.load %arg6[%c8, %c0_12] : memref<48x512xf32, #tpu.memory_space<vmem>>, vector<4x256xf32>
    tpu.vector_store %arg6[%c8, %c0_12], %24 {strides = array<i32>} : memref<48x512xf32, #tpu.memory_space<vmem>>, vector<4x256xf32>,
    %26 = vector.extract_strided_slice %1 {offsets = [0, 255], sizes = [4, 1], strides = [1, 1]} : vector<4x256xf32> to vector<4x1xf32>
    %27 = vector.extract_strided_slice %1 {offsets = [0, 0], sizes = [4, 255], strides = [1, 1]} : vector<4x256xf32> to vector<4x255xf32>
    %28 = tpu.concatenate %26, %27 in 1 : vector<4x1xf32>, vector<4x255xf32> -> vector<4x256xf32>
    %c3 = arith.constant 3 : index
    %c0_13 = arith.constant 0 : index
    %c0_14 = arith.constant 0 : index
    %29 = vector.load %arg4[%c3, %c0_13, %c0_14] : memref<9x1x256xf32, #tpu.memory_space<vmem>>, vector<1x1x256xf32>
    %30 = vector.shape_cast %29 : vector<1x1x256xf32> to vector<1x256xf32>
    %31 = vector.broadcast %30 : vector<1x256xf32> to vector<4x256xf32>
    %32 = arith.mulf %28, %31 : vector<4x256xf32>
    %c12 = arith.constant 12 : index
    %c0_15 = arith.constant 0 : index
    %33 = vector.load %arg6[%c12, %c0_15] : memref<48x512xf32, #tpu.memory_space<vmem>>, vector<4x256xf32>
    tpu.vector_store %arg6[%c12, %c0_15], %32 {strides = array<i32>} : memref<48x512xf32, #tpu.memory_space<vmem>>, vector<4x256xf32>,
    %c4_16 = arith.constant 4 : index
    %c0_17 = arith.constant 0 : index
    %c0_18 = arith.constant 0 : index
    %34 = vector.load %arg4[%c4_16, %c0_17, %c0_18] : memref<9x1x256xf32, #tpu.memory_space<vmem>>, vector<1x1x256xf32>
    %35 = vector.shape_cast %34 : vector<1x1x256xf32> to vector<1x256xf32>
    %36 = vector.broadcast %35 : vector<1x256xf32> to vector<4x256xf32>
    %37 = arith.mulf %1, %36 : vector<4x256xf32>
    %c16 = arith.constant 16 : index
    %c0_19 = arith.constant 0 : index
    %38 = vector.load %arg6[%c16, %c0_19] : memref<48x512xf32, #tpu.memory_space<vmem>>, vector<4x256xf32>
    tpu.vector_store %arg6[%c16, %c0_19], %37 {strides = array<i32>} : memref<48x512xf32, #tpu.memory_space<vmem>>, vector<4x256xf32>,
    %39 = vector.extract_strided_slice %1 {offsets = [0, 1], sizes = [4, 255], strides = [1, 1]} : vector<4x256xf32> to vector<4x255xf32>
    %40 = vector.extract_strided_slice %1 {offsets = [0, 0], sizes = [4, 1], strides = [1, 1]} : vector<4x256xf32> to vector<4x1xf32>
    %41 = tpu.concatenate %39, %40 in 1 : vector<4x255xf32>, vector<4x1xf32> -> vector<4x256xf32>
    %c5 = arith.constant 5 : index
    %c0_20 = arith.constant 0 : index
    %c0_21 = arith.constant 0 : index
    %42 = vector.load %arg4[%c5, %c0_20, %c0_21] : memref<9x1x256xf32, #tpu.memory_space<vmem>>, vector<1x1x256xf32>
    %43 = vector.shape_cast %42 : vector<1x1x256xf32> to vector<1x256xf32>
    %44 = vector.broadcast %43 : vector<1x256xf32> to vector<4x256xf32>
    %45 = arith.mulf %41, %44 : vector<4x256xf32>
    %c20 = arith.constant 20 : index
    %c0_22 = arith.constant 0 : index
    %46 = vector.load %arg6[%c20, %c0_22] : memref<48x512xf32, #tpu.memory_space<vmem>>, vector<4x256xf32>
    tpu.vector_store %arg6[%c20, %c0_22], %45 {strides = array<i32>} : memref<48x512xf32, #tpu.memory_space<vmem>>, vector<4x256xf32>,
    %47 = vector.extract_strided_slice %1 {offsets = [0, 15], sizes = [4, 241], strides = [1, 1]} : vector<4x256xf32> to vector<4x241xf32>
    %48 = vector.extract_strided_slice %1 {offsets = [0, 0], sizes = [4, 15], strides = [1, 1]} : vector<4x256xf32> to vector<4x15xf32>
    %49 = tpu.concatenate %47, %48 in 1 : vector<4x241xf32>, vector<4x15xf32> -> vector<4x256xf32>
    %c6 = arith.constant 6 : index
    %c0_23 = arith.constant 0 : index
    %c0_24 = arith.constant 0 : index
    %50 = vector.load %arg4[%c6, %c0_23, %c0_24] : memref<9x1x256xf32, #tpu.memory_space<vmem>>, vector<1x1x256xf32>
    %51 = vector.shape_cast %50 : vector<1x1x256xf32> to vector<1x256xf32>
    %52 = vector.broadcast %51 : vector<1x256xf32> to vector<4x256xf32>
    %53 = arith.mulf %49, %52 : vector<4x256xf32>
    %c24 = arith.constant 24 : index
    %c0_25 = arith.constant 0 : index
    %54 = vector.load %arg6[%c24, %c0_25] : memref<48x512xf32, #tpu.memory_space<vmem>>, vector<4x256xf32>
    tpu.vector_store %arg6[%c24, %c0_25], %53 {strides = array<i32>} : memref<48x512xf32, #tpu.memory_space<vmem>>, vector<4x256xf32>,
    %55 = vector.extract_strided_slice %1 {offsets = [0, 16], sizes = [4, 240], strides = [1, 1]} : vector<4x256xf32> to vector<4x240xf32>
    %56 = vector.extract_strided_slice %1 {offsets = [0, 0], sizes = [4, 16], strides = [1, 1]} : vector<4x256xf32> to vector<4x16xf32>
    %57 = tpu.concatenate %55, %56 in 1 : vector<4x240xf32>, vector<4x16xf32> -> vector<4x256xf32>
    %c7 = arith.constant 7 : index
    %c0_26 = arith.constant 0 : index
    %c0_27 = arith.constant 0 : index
    %58 = vector.load %arg4[%c7, %c0_26, %c0_27] : memref<9x1x256xf32, #tpu.memory_space<vmem>>, vector<1x1x256xf32>
    %59 = vector.shape_cast %58 : vector<1x1x256xf32> to vector<1x256xf32>
    %60 = vector.broadcast %59 : vector<1x256xf32> to vector<4x256xf32>
    %61 = arith.mulf %57, %60 : vector<4x256xf32>
    %c28 = arith.constant 28 : index
    %c0_28 = arith.constant 0 : index
    %62 = vector.load %arg6[%c28, %c0_28] : memref<48x512xf32, #tpu.memory_space<vmem>>, vector<4x256xf32>
    tpu.vector_store %arg6[%c28, %c0_28], %61 {strides = array<i32>} : memref<48x512xf32, #tpu.memory_space<vmem>>, vector<4x256xf32>,
    %63 = vector.extract_strided_slice %1 {offsets = [0, 17], sizes = [4, 239], strides = [1, 1]} : vector<4x256xf32> to vector<4x239xf32>
    %64 = vector.extract_strided_slice %1 {offsets = [0, 0], sizes = [4, 17], strides = [1, 1]} : vector<4x256xf32> to vector<4x17xf32>
    %65 = tpu.concatenate %63, %64 in 1 : vector<4x239xf32>, vector<4x17xf32> -> vector<4x256xf32>
    %c8_29 = arith.constant 8 : index
    %c0_30 = arith.constant 0 : index
    %c0_31 = arith.constant 0 : index
    %66 = vector.load %arg4[%c8_29, %c0_30, %c0_31] : memref<9x1x256xf32, #tpu.memory_space<vmem>>, vector<1x1x256xf32>
    %67 = vector.shape_cast %66 : vector<1x1x256xf32> to vector<1x256xf32>
    %68 = vector.broadcast %67 : vector<1x256xf32> to vector<4x256xf32>
    %69 = arith.mulf %65, %68 : vector<4x256xf32>
    %c32 = arith.constant 32 : index
    %c0_32 = arith.constant 0 : index
    %70 = vector.load %arg6[%c32, %c0_32] : memref<48x512xf32, #tpu.memory_space<vmem>>, vector<4x256xf32>
    tpu.vector_store %arg6[%c32, %c0_32], %69 {strides = array<i32>} : memref<48x512xf32, #tpu.memory_space<vmem>>, vector<4x256xf32>,
    %c1_33 = arith.constant 1 : index
    %c0_34 = arith.constant 0 : index
    %c0_35 = arith.constant 0 : index
    %71 = vector.load %arg1[%c1_33, %c0_34, %c0_35] : memref<2x4x256xf32, #tpu.memory_space<vmem>>, vector<1x4x256xf32>
    %72 = vector.shape_cast %71 : vector<1x4x256xf32> to vector<4x256xf32>
    %73 = vector.extract_strided_slice %72 {offsets = [0, 239], sizes = [4, 17], strides = [1, 1]} : vector<4x256xf32> to vector<4x17xf32>
    %74 = vector.extract_strided_slice %72 {offsets = [0, 0], sizes = [4, 239], strides = [1, 1]} : vector<4x256xf32> to vector<4x239xf32>
    %75 = tpu.concatenate %73, %74 in 1 : vector<4x17xf32>, vector<4x239xf32> -> vector<4x256xf32>
    %c0_36 = arith.constant 0 : index
    %c0_37 = arith.constant 0 : index
    %c0_38 = arith.constant 0 : index
    %76 = vector.load %arg4[%c0_36, %c0_37, %c0_38] : memref<9x1x256xf32, #tpu.memory_space<vmem>>, vector<1x1x256xf32>
    %77 = vector.shape_cast %76 : vector<1x1x256xf32> to vector<1x256xf32>
    %78 = vector.broadcast %77 : vector<1x256xf32> to vector<4x256xf32>
    %79 = arith.mulf %75, %78 : vector<4x256xf32>
    %c0_39 = arith.constant 0 : index
    %c256 = arith.constant 256 : index
    %80 = vector.load %arg6[%c0_39, %c256] : memref<48x512xf32, #tpu.memory_space<vmem>>, vector<4x256xf32>
    tpu.vector_store %arg6[%c0_39, %c256], %79 {strides = array<i32>} : memref<48x512xf32, #tpu.memory_space<vmem>>, vector<4x256xf32>,
    %81 = vector.extract_strided_slice %72 {offsets = [0, 240], sizes = [4, 16], strides = [1, 1]} : vector<4x256xf32> to vector<4x16xf32>
    %82 = vector.extract_strided_slice %72 {offsets = [0, 0], sizes = [4, 240], strides = [1, 1]} : vector<4x256xf32> to vector<4x240xf32>
    %83 = tpu.concatenate %81, %82 in 1 : vector<4x16xf32>, vector<4x240xf32> -> vector<4x256xf32>
    %c1_40 = arith.constant 1 : index
    %c0_41 = arith.constant 0 : index
    %c0_42 = arith.constant 0 : index
    %84 = vector.load %arg4[%c1_40, %c0_41, %c0_42] : memref<9x1x256xf32, #tpu.memory_space<vmem>>, vector<1x1x256xf32>
    %85 = vector.shape_cast %84 : vector<1x1x256xf32> to vector<1x256xf32>
    %86 = vector.broadcast %85 : vector<1x256xf32> to vector<4x256xf32>
    %87 = arith.mulf %83, %86 : vector<4x256xf32>
    %c4_43 = arith.constant 4 : index
    %c256_44 = arith.constant 256 : index
    %88 = vector.load %arg6[%c4_43, %c256_44] : memref<48x512xf32, #tpu.memory_space<vmem>>, vector<4x256xf32>
    tpu.vector_store %arg6[%c4_43, %c256_44], %87 {strides = array<i32>} : memref<48x512xf32, #tpu.memory_space<vmem>>, vector<4x256xf32>,
    %89 = vector.extract_strided_slice %72 {offsets = [0, 241], sizes = [4, 15], strides = [1, 1]} : vector<4x256xf32> to vector<4x15xf32>
    %90 = vector.extract_strided_slice %72 {offsets = [0, 0], sizes = [4, 241], strides = [1, 1]} : vector<4x256xf32> to vector<4x241xf32>
    %91 = tpu.concatenate %89, %90 in 1 : vector<4x15xf32>, vector<4x241xf32> -> vector<4x256xf32>
    %c2_45 = arith.constant 2 : index
    %c0_46 = arith.constant 0 : index
    %c0_47 = arith.constant 0 : index
    %92 = vector.load %arg4[%c2_45, %c0_46, %c0_47] : memref<9x1x256xf32, #tpu.memory_space<vmem>>, vector<1x1x256xf32>
    %93 = vector.shape_cast %92 : vector<1x1x256xf32> to vector<1x256xf32>
    %94 = vector.broadcast %93 : vector<1x256xf32> to vector<4x256xf32>
    %95 = arith.mulf %91, %94 : vector<4x256xf32>
    %c8_48 = arith.constant 8 : index
    %c256_49 = arith.constant 256 : index
    %96 = vector.load %arg6[%c8_48, %c256_49] : memref<48x512xf32, #tpu.memory_space<vmem>>, vector<4x256xf32>
    tpu.vector_store %arg6[%c8_48, %c256_49], %95 {strides = array<i32>} : memref<48x512xf32, #tpu.memory_space<vmem>>, vector<4x256xf32>,
    %97 = vector.extract_strided_slice %72 {offsets = [0, 255], sizes = [4, 1], strides = [1, 1]} : vector<4x256xf32> to vector<4x1xf32>
    %98 = vector.extract_strided_slice %72 {offsets = [0, 0], sizes = [4, 255], strides = [1, 1]} : vector<4x256xf32> to vector<4x255xf32>
    %99 = tpu.concatenate %97, %98 in 1 : vector<4x1xf32>, vector<4x255xf32> -> vector<4x256xf32>
    %c3_50 = arith.constant 3 : index
    %c0_51 = arith.constant 0 : index
    %c0_52 = arith.constant 0 : index
    %100 = vector.load %arg4[%c3_50, %c0_51, %c0_52] : memref<9x1x256xf32, #tpu.memory_space<vmem>>, vector<1x1x256xf32>
    %101 = vector.shape_cast %100 : vector<1x1x256xf32> to vector<1x256xf32>
    %102 = vector.broadcast %101 : vector<1x256xf32> to vector<4x256xf32>
    %103 = arith.mulf %99, %102 : vector<4x256xf32>
    %c12_53 = arith.constant 12 : index
    %c256_54 = arith.constant 256 : index
    %104 = vector.load %arg6[%c12_53, %c256_54] : memref<48x512xf32, #tpu.memory_space<vmem>>, vector<4x256xf32>
    tpu.vector_store %arg6[%c12_53, %c256_54], %103 {strides = array<i32>} : memref<48x512xf32, #tpu.memory_space<vmem>>, vector<4x256xf32>,
    %c4_55 = arith.constant 4 : index
    %c0_56 = arith.constant 0 : index
    %c0_57 = arith.constant 0 : index
    %105 = vector.load %arg4[%c4_55, %c0_56, %c0_57] : memref<9x1x256xf32, #tpu.memory_space<vmem>>, vector<1x1x256xf32>
    %106 = vector.shape_cast %105 : vector<1x1x256xf32> to vector<1x256xf32>
    %107 = vector.broadcast %106 : vector<1x256xf32> to vector<4x256xf32>
    %108 = arith.mulf %72, %107 : vector<4x256xf32>
    %c16_58 = arith.constant 16 : index
    %c256_59 = arith.constant 256 : index
    %109 = vector.load %arg6[%c16_58, %c256_59] : memref<48x512xf32, #tpu.memory_space<vmem>>, vector<4x256xf32>
    tpu.vector_store %arg6[%c16_58, %c256_59], %108 {strides = array<i32>} : memref<48x512xf32, #tpu.memory_space<vmem>>, vector<4x256xf32>,
    %110 = vector.extract_strided_slice %72 {offsets = [0, 1], sizes = [4, 255], strides = [1, 1]} : vector<4x256xf32> to vector<4x255xf32>
    %111 = vector.extract_strided_slice %72 {offsets = [0, 0], sizes = [4, 1], strides = [1, 1]} : vector<4x256xf32> to vector<4x1xf32>
    %112 = tpu.concatenate %110, %111 in 1 : vector<4x255xf32>, vector<4x1xf32> -> vector<4x256xf32>
    %c5_60 = arith.constant 5 : index
    %c0_61 = arith.constant 0 : index
    %c0_62 = arith.constant 0 : index
    %113 = vector.load %arg4[%c5_60, %c0_61, %c0_62] : memref<9x1x256xf32, #tpu.memory_space<vmem>>, vector<1x1x256xf32>
    %114 = vector.shape_cast %113 : vector<1x1x256xf32> to vector<1x256xf32>
    %115 = vector.broadcast %114 : vector<1x256xf32> to vector<4x256xf32>
    %116 = arith.mulf %112, %115 : vector<4x256xf32>
    %c20_63 = arith.constant 20 : index
    %c256_64 = arith.constant 256 : index
    %117 = vector.load %arg6[%c20_63, %c256_64] : memref<48x512xf32, #tpu.memory_space<vmem>>, vector<4x256xf32>
    tpu.vector_store %arg6[%c20_63, %c256_64], %116 {strides = array<i32>} : memref<48x512xf32, #tpu.memory_space<vmem>>, vector<4x256xf32>,
    %118 = vector.extract_strided_slice %72 {offsets = [0, 15], sizes = [4, 241], strides = [1, 1]} : vector<4x256xf32> to vector<4x241xf32>
    %119 = vector.extract_strided_slice %72 {offsets = [0, 0], sizes = [4, 15], strides = [1, 1]} : vector<4x256xf32> to vector<4x15xf32>
    %120 = tpu.concatenate %118, %119 in 1 : vector<4x241xf32>, vector<4x15xf32> -> vector<4x256xf32>
    %c6_65 = arith.constant 6 : index
    %c0_66 = arith.constant 0 : index
    %c0_67 = arith.constant 0 : index
    %121 = vector.load %arg4[%c6_65, %c0_66, %c0_67] : memref<9x1x256xf32, #tpu.memory_space<vmem>>, vector<1x1x256xf32>
    %122 = vector.shape_cast %121 : vector<1x1x256xf32> to vector<1x256xf32>
    %123 = vector.broadcast %122 : vector<1x256xf32> to vector<4x256xf32>
    %124 = arith.mulf %120, %123 : vector<4x256xf32>
    %c24_68 = arith.constant 24 : index
    %c256_69 = arith.constant 256 : index
    %125 = vector.load %arg6[%c24_68, %c256_69] : memref<48x512xf32, #tpu.memory_space<vmem>>, vector<4x256xf32>
    tpu.vector_store %arg6[%c24_68, %c256_69], %124 {strides = array<i32>} : memref<48x512xf32, #tpu.memory_space<vmem>>, vector<4x256xf32>,
    %126 = vector.extract_strided_slice %72 {offsets = [0, 16], sizes = [4, 240], strides = [1, 1]} : vector<4x256xf32> to vector<4x240xf32>
    %127 = vector.extract_strided_slice %72 {offsets = [0, 0], sizes = [4, 16], strides = [1, 1]} : vector<4x256xf32> to vector<4x16xf32>
    %128 = tpu.concatenate %126, %127 in 1 : vector<4x240xf32>, vector<4x16xf32> -> vector<4x256xf32>
    %c7_70 = arith.constant 7 : index
    %c0_71 = arith.constant 0 : index
    %c0_72 = arith.constant 0 : index
    %129 = vector.load %arg4[%c7_70, %c0_71, %c0_72] : memref<9x1x256xf32, #tpu.memory_space<vmem>>, vector<1x1x256xf32>
    %130 = vector.shape_cast %129 : vector<1x1x256xf32> to vector<1x256xf32>
    %131 = vector.broadcast %130 : vector<1x256xf32> to vector<4x256xf32>
    %132 = arith.mulf %128, %131 : vector<4x256xf32>
    %c28_73 = arith.constant 28 : index
    %c256_74 = arith.constant 256 : index
    %133 = vector.load %arg6[%c28_73, %c256_74] : memref<48x512xf32, #tpu.memory_space<vmem>>, vector<4x256xf32>
    tpu.vector_store %arg6[%c28_73, %c256_74], %132 {strides = array<i32>} : memref<48x512xf32, #tpu.memory_space<vmem>>, vector<4x256xf32>,
    %134 = vector.extract_strided_slice %72 {offsets = [0, 17], sizes = [4, 239], strides = [1, 1]} : vector<4x256xf32> to vector<4x239xf32>
    %135 = vector.extract_strided_slice %72 {offsets = [0, 0], sizes = [4, 17], strides = [1, 1]} : vector<4x256xf32> to vector<4x17xf32>
    %136 = tpu.concatenate %134, %135 in 1 : vector<4x239xf32>, vector<4x17xf32> -> vector<4x256xf32>
    %c8_75 = arith.constant 8 : index
    %c0_76 = arith.constant 0 : index
    %c0_77 = arith.constant 0 : index
    %137 = vector.load %arg4[%c8_75, %c0_76, %c0_77] : memref<9x1x256xf32, #tpu.memory_space<vmem>>, vector<1x1x256xf32>
    %138 = vector.shape_cast %137 : vector<1x1x256xf32> to vector<1x256xf32>
    %139 = vector.broadcast %138 : vector<1x256xf32> to vector<4x256xf32>
    %140 = arith.mulf %136, %139 : vector<4x256xf32>
    %c32_78 = arith.constant 32 : index
    %c256_79 = arith.constant 256 : index
    %141 = vector.load %arg6[%c32_78, %c256_79] : memref<48x512xf32, #tpu.memory_space<vmem>>, vector<4x256xf32>
    tpu.vector_store %arg6[%c32_78, %c256_79], %140 {strides = array<i32>} : memref<48x512xf32, #tpu.memory_space<vmem>>, vector<4x256xf32>,
    %cst = arith.constant 0.000000e+00 : f32
    %142 = vector.broadcast %cst : f32 to vector<12x512xf32>
    %c36 = arith.constant 36 : index
    %c0_80 = arith.constant 0 : index
    %143 = vector.load %arg6[%c36, %c0_80] : memref<48x512xf32, #tpu.memory_space<vmem>>, vector<12x512xf32>
    tpu.vector_store %arg6[%c36, %c0_80], %142 {strides = array<i32>} : memref<48x512xf32, #tpu.memory_space<vmem>>, vector<12x512xf32>,
    %c0_81 = arith.constant 0 : index
    %c0_82 = arith.constant 0 : index
    %144 = vector.load %arg2[%c0_81, %c0_82] : memref<8x48xf32, #tpu.memory_space<vmem>>, vector<8x48xf32>
    %c0_83 = arith.constant 0 : index
    %c0_84 = arith.constant 0 : index
    %145 = vector.load %arg6[%c0_83, %c0_84] : memref<48x512xf32, #tpu.memory_space<vmem>>, vector<48x512xf32>
    %cst_85 = arith.constant dense<0.000000e+00> : vector<8x512xf32>
    %146 = tpu.matmul %144, %145, %cst_85 {dimension_numbers = #tpu.dot_dimension_numbers<[1], [0], [0], [1], [0, 0, 1, 1], [], []>} : vector<8x48xf32>, vector<48x512xf32>, vector<8x512xf32> -> vector<8x512xf32>
    %c0_86 = arith.constant 0 : index
    %c0_87 = arith.constant 0 : index
    %147 = vector.load %arg3[%c0_86, %c0_87] : memref<8x1xf32, #tpu.memory_space<vmem>>, vector<8x1xf32>
    %148 = vector.broadcast %147 : vector<8x1xf32> to vector<8x512xf32>
    %149 = arith.addf %146, %148 : vector<8x512xf32>
    %150 = vector.extract_strided_slice %149 {offsets = [0, 0], sizes = [8, 256], strides = [1, 1]} : vector<8x512xf32> to vector<8x256xf32>
    %c0_88 = arith.constant 0 : index
    %c0_89 = arith.constant 0 : index
    %c0_90 = arith.constant 0 : index
    %151 = vector.load %arg5[%c0_88, %c0_89, %c0_90] : memref<2x8x256xf32, #tpu.memory_space<vmem>>, vector<1x8x256xf32>
    %152 = vector.shape_cast %151 : vector<1x8x256xf32> to vector<8x256xf32>
    %153 = vector.shape_cast %150 : vector<8x256xf32> to vector<1x8x256xf32>
    tpu.vector_store %arg5[%c0_88, %c0_89, %c0_90], %153 {strides = array<i32>} : memref<2x8x256xf32, #tpu.memory_space<vmem>>, vector<1x8x256xf32>,
    %154 = vector.extract_strided_slice %149 {offsets = [0, 256], sizes = [8, 256], strides = [1, 1]} : vector<8x512xf32> to vector<8x256xf32>
    %c1_91 = arith.constant 1 : index
    %c0_92 = arith.constant 0 : index
    %c0_93 = arith.constant 0 : index
    %155 = vector.load %arg5[%c1_91, %c0_92, %c0_93] : memref<2x8x256xf32, #tpu.memory_space<vmem>>, vector<1x8x256xf32>
    %156 = vector.shape_cast %155 : vector<1x8x256xf32> to vector<8x256xf32>
    %157 = vector.shape_cast %154 : vector<8x256xf32> to vector<1x8x256xf32>
    tpu.vector_store %arg5[%c1_91, %c0_92, %c0_93], %157 {strides = array<i32>} : memref<2x8x256xf32, #tpu.memory_space<vmem>>, vector<1x8x256xf32>,
    return
  }
  func.func @transform_0(%arg0: i32) -> (i32, i32, i32) {
    %c0_i32 = arith.constant 0 : i32
    %c0_i32_0 = arith.constant 0 : i32
    %c0_i32_1 = arith.constant 0 : i32
    return %arg0, %c0_i32, %c0_i32_0 : i32, i32, i32
  }
  func.func @transform_1(%arg0: i32) -> (i32, i32) {
    %c0_i32 = arith.constant 0 : i32
    %c0_i32_0 = arith.constant 0 : i32
    %c0_i32_1 = arith.constant 0 : i32
    return %c0_i32, %c0_i32_0 : i32, i32
  }
  func.func @transform_2(%arg0: i32) -> (i32, i32) {
    %c0_i32 = arith.constant 0 : i32
    %c0_i32_0 = arith.constant 0 : i32
    %c0_i32_1 = arith.constant 0 : i32
    return %c0_i32, %c0_i32_0 : i32, i32
  }
  func.func @transform_3(%arg0: i32) -> (i32, i32, i32) {
    %c0_i32 = arith.constant 0 : i32
    %c0_i32_0 = arith.constant 0 : i32
    %c0_i32_1 = arith.constant 0 : i32
    %c0_i32_2 = arith.constant 0 : i32
    return %c0_i32, %c0_i32_0, %c0_i32_1 : i32, i32, i32
  }
  func.func @transform_4(%arg0: i32) -> (i32, i32, i32) {
    %c0_i32 = arith.constant 0 : i32
    %c0_i32_0 = arith.constant 0 : i32
    %c0_i32_1 = arith.constant 0 : i32
    return %arg0, %c0_i32, %c0_i32_0 : i32, i32, i32
  }
}

</mosaic_0001>

<bundles_post_ra>
// kernel: tpu_custom_call.1
= control target key start
LH: loop header
LB: loop body
LE: loop exit
PB: predicated region body
PF: predicated region fallthrough
CT: control target
= control target key end

     0   :  { %9 = vsyncpa [#allocation4], 0  ;;  %s1139_s0 = inlined_call_operand.hbm [shape: f32[2,4,256], index: 0, kind: input, shape index: {}]   ;;  %s1140_s1 = inlined_call_operand.hbm [shape: f32[8,48], index: 1, kind: input, shape index: {}]   ;;  %s1141_s2 = inlined_call_operand.vmem [shape: f32[8,1], index: 2, kind: input, shape index: {}]   ;;  %s1142_s3 = inlined_call_operand.vmem [shape: f32[9,1,256], index: 3, kind: input, shape index: {}]   ;;  %s1143_s4 = inlined_call_operand.hbm [shape: f32[2,8,256], index: 4, kind: output, shape index: {}]  }
   0x1   :  { %10 = vsyncpa [#allocation7], 0 }
   0x2   :  { %11 = vsyncpa [#allocation5], 0  ;;  %s892_s15 = smov [#allocation3]   ;;  %s820_s19 = scalar_lea.hbm %s1139_s0, 256 }
   0x3   :  { %s17_s16 = sshll.u32 %s892_s15, 4  ;;  %p821_p0 = scmp.ne.s32.totalorder %s1139_s0, %s820_s19  ;;  %s18_s16 = int_to_ptr.vmem [resolvable:$true] %s17_s16 }
   0x4   :  { %p824_p1 = scmp.lt.u32.totalorder %s820_s19, %s1139_s0 }
   0x6   :  { %p826_p2 = pnand %p824_p1, %p821_p0 }
   0x8   :  { %829 = shalt.err (!%p826_p2)
}
   0x9   :  { %s830_s24 = scalar_lea.vmem %s18_s16, 256  ;;  %p835_p4 = scmp.lt.s32.totalorder %s18_s16, %s18_s16 }
   0xa   :  { %p831_p3 = scmp.ne.s32.totalorder %s18_s16, %s830_s24  ;;  %p836_p5 = scmp.lt.s32.totalorder %s830_s24, %s830_s24 }
   0xc   :  { %p837_p6 = por %p836_p5, %p835_p4 }
   0xe   :  { %p838_p7 = pnand %p837_p6, %p831_p3 }
  0x10   :  { %841 = shalt.err (!%p838_p7)
}
  0x11   :  { %s893_s25 = smov 128   ;;  %s894_s26 = smov 8  }
  0x12   :  { %23 = dma.hbm_to_vmem [thread:$0]  %s1139_s0, 256, %s18_s16, [#allocation4], %s893_s25, %s893_s25, %s894_s26  }
  0x13   :  { %s895_s29 = smov [#allocation6]   ;;  %s842_s7 = scalar_lea.hbm %s1140_s1, 128 }
  0x14   :  { %s30_s30 = sshll.u32 %s895_s29, 4  ;;  %p843_p8 = scmp.ne.s32.totalorder %s1140_s1, %s842_s7  ;;  %s31_s30 = int_to_ptr.vmem [resolvable:$true] %s30_s30 }
  0x15   :  { %p846_p9 = scmp.lt.u32.totalorder %s842_s7, %s1140_s1 }
  0x17   :  { %p848_p10 = pnand %p846_p9, %p843_p8 }
  0x19   :  { %851 = shalt.err (!%p848_p10)
}
  0x1a   :  { %s852_s12 = scalar_lea.vmem %s31_s30, 128  ;;  %p857_p12 = scmp.lt.s32.totalorder %s31_s30, %s31_s30 }
  0x1b   :  { %p853_p11 = scmp.ne.s32.totalorder %s31_s30, %s852_s12  ;;  %p858_p13 = scmp.lt.s32.totalorder %s852_s12, %s852_s12 }
  0x1d   :  { %p859_p0 = por %p858_p13, %p857_p12 }
  0x1f   :  { %p860_p1 = pnand %p859_p0, %p853_p11 }
  0x21   :  { %863 = shalt.err (!%p860_p1)
}
  0x22   :  { %33 = dma.hbm_to_vmem [thread:$0]  %s1140_s1, 128, %s31_s30, [#allocation7]  }
  0x23   :  { %886 = dma.done.wait [#allocation4], 256  }
  0x24   :  { %887 = vsyncadd [#allocation4], 4294967040 }
  0x25   :  { %888 = dma.done.wait [#allocation7], 128  }
  0x26   :  { %889 = vsyncadd [#allocation7], 4294967168  ;;  %v957_v0 = vld [vmem:[#allocation3] sm:$0xff]  ;;  %s896_s14 = smov 1   ;;  %s897_s15 = smov 16   ;;  %v964_v2 = vld [vmem:[#allocation3 + $0x8] sm:$0xff]  ;;  %v59_v4 = vlaneseq }
  0x27   :  { %136 = vrot.lane.b32.xlu1 %v957_v0, %s896_s14  ;;  %76 = vrot.lane.b32.xlu0 %v957_v0, %s897_s15  ;;  %v46_v1 = vcombine.high %v957_v0, %v957_v0  ;;  %v308_v3 = vcombine.high %v964_v2, %v964_v2  ;;  %v762_v8 = vld [vmem:[%s1142_s3 + $0x8] sm:$0x3]  ;;  %s898_s17 = smov 17   ;;  %s899_s18 = smov 15   ;;  %v902_v20 = vmov 0.0   ;;  %v584_v21 = vld [vmem:[%s1141_s2] sm:$0xff] }
  0x28   :  { %v60_v5 = vshrl.u32 %v59_v4, 7  ;;  %v770_v14 = vld [vmem:[%s1142_s3 + $0x8] sm:$0x3]  ;;  %s900_s21 = smov 127   ;;  %s901_s22 = smov 112   ;;  %658 = vmatprep.mubr.f32.mxu0 %v902_v20  ;;  %729 = vmatprep.mubr.f32.mxu1 %v902_v20  ;;  %v905_v22 = vmov 0  }
  0x29   :  { %552 = vst [vmem:[#allocation2 + $0x88] sm:$0xf0] %v902_v20  ;;  %551 = vst [vmem:[#allocation2 + $0x80] sm:$0xf0] %v902_v20  ;;  %s903_s23 = smov 113   ;;  %s904_s24 = smov 111   ;;  %817 = vset.pattern.permute.xlu0 %v905_v22 }
  0x2a   :  { %v973_v6 = vsub.s32 0, %v60_v5  ;;  %v975_v7 = vsub.s32 1, %v60_v5  ;;  %553 = vst [vmem:[#allocation2 + $0x90] sm:$0xf0] %v902_v20  ;;  %554 = vst [vmem:[#allocation2 + $0x98] sm:$0xf0] %v902_v20 }
  0x2b   :  { %337 = vrot.lane.b32.xlu1 %v964_v2, %s897_s15  ;;  %73 = vrot.lane.b32.xlu0 %v46_v1, %s897_s15  ;;  %v759_v23 = vld [vmem:[%s1142_s3 + $0x2] sm:$0x3]  ;;  %vm78_vm0 = vcmask 130048   ;;  %v761_v28 = vld [vmem:[%s1142_s3 + $0x6] sm:$0x3]  ;;  %vm138_vm1 = vcmask 7168  }
  0x2c   :  { %v172_v9 = vrot.slane %v762_v8, %v973_v6  ;;  %v176_v10 = vrot.slane %v762_v8, %v975_v7  ;;  %v426_v15 = vrot.slane %v770_v14, %v973_v6  ;;  %v430_v16 = vrot.slane %v770_v14, %v975_v7  ;;  %v767_v29 = vld [vmem:[%s1142_s3 + $0x2] sm:$0x3]  ;;  %v769_v36 = vld [vmem:[%s1142_s3 + $0x6] sm:$0x3]  ;;  %v57_v55 = vld [vmem:[%s1142_s3] sm:$0x3] }
  0x2d   :  { %v89_v26 = vrot.slane %v759_v23, %v973_v6  ;;  %v93_v27 = vrot.slane %v759_v23, %v975_v7  ;;  %v149_v34 = vrot.slane %v761_v28, %v973_v6  ;;  %v153_v35 = vrot.slane %v761_v28, %v975_v7  ;;  %v760_v4 = vld [vmem:[%s1142_s3 + $0x4] sm:$0x3] }
  0x2e   :  { %v177_v11 = vcombine.low %v172_v9, %v176_v10  ;;  %v431_v17 = vcombine.low %v426_v15, %v430_v16  ;;  %v348_v39 = vrot.slane %v767_v29, %v973_v6  ;;  %v352_v40 = vrot.slane %v767_v29, %v975_v7 }
  0x2f   :  { %133 = vrot.lane.b32.xlu1 %v46_v1, %s896_s14  ;;  %334 = vrot.lane.b32.xlu0 %v308_v3, %s897_s15  ;;  %v404_v45 = vrot.slane %v769_v36, %v973_v6  ;;  %v408_v46 = vrot.slane %v769_v36, %v975_v7  ;;  %vm52_vm2 = vcmask 138240   ;;  %vm111_vm3 = vcmask 121856   ;;  %v763_v36 = vld [vmem:[%s1142_s3 + $0xa] sm:$0x3] }
  0x30   :  { %v179_v12 = vmul.f32 %v177_v11, %v957_v0  ;;  %v433_v18 = vmul.f32 %v431_v17, %v964_v2  ;;  %v122_v15 = vrot.slane %v760_v4, %v973_v6  ;;  %v126_v16 = vrot.slane %v760_v4, %v975_v7  ;;  %v318_v17 = vld [vmem:[%s1142_s3] sm:$0x3] }
  0x31   :  { %vm189_vm4 = vcmask 1039360   ;;  %vm249_vm5 = vcmask 916480   ;;  %vm222_vm6 = vcmask 924672   ;;  %vm282_vm7 = vcmask 908288  }
  0x32   :  { %v181_v13 = vcombine.high %v179_v12, %v179_v12  ;;  %183 = vst [vmem:[#allocation2 + $0x40] sm:$0xf] %v179_v12  ;;  %v435_v19 = vcombine.high %v433_v18, %v433_v18  ;;  %437 = vst [vmem:[#allocation2 + $0x50] sm:$0xf] %v433_v18  ;;  %vm590_vm8 = vcmask 392192  }
  0x33   :  { %393 = vrot.lane.b32.xlu1 %v964_v2, %s896_s14  ;;  %390 = vrot.lane.b32.xlu0 %v308_v3, %s896_s14 }
  0x34   :  { %184 = vst [vmem:[#allocation2 + $0x48] sm:$0xf] %v181_v13  ;;  %438 = vst [vmem:[#allocation2 + $0x58] sm:$0xf] %v435_v19 }
  0x37   :  { %50 = vrot.lane.b32.xlu1 %v957_v0, %s898_s17  ;;  %47 = vrot.lane.b32.xlu0 %v46_v1, %s898_s17 }
  0x3b   :  { %109 = vrot.lane.b32.xlu1 %v957_v0, %s899_s18  ;;  %106 = vrot.lane.b32.xlu0 %v46_v1, %s899_s18 }
  0x3f   :  { %312 = vrot.lane.b32.xlu1 %v964_v2, %s898_s17  ;;  %309 = vrot.lane.b32.xlu0 %v308_v3, %s898_s17 }
  0x43   :  { %368 = vrot.lane.b32.xlu1 %v964_v2, %s899_s18  ;;  %365 = vrot.lane.b32.xlu0 %v308_v3, %s899_s18 }
  0x47   :  { %187 = vrot.lane.b32.xlu1 %v46_v1, %s900_s21  ;;  %185 = vrot.lane.b32.xlu0 %v957_v0, %s900_s21 }
  0x4b   :  { %247 = vrot.lane.b32.xlu1 %v46_v1, %s901_s22  ;;  %245 = vrot.lane.b32.xlu0 %v957_v0, %s901_s22 }
  0x4f   :  { %441 = vrot.lane.b32.xlu1 %v308_v3, %s900_s21  ;;  %439 = vrot.lane.b32.xlu0 %v964_v2, %s900_s21 }
  0x53   :  { %497 = vrot.lane.b32.xlu1 %v308_v3, %s901_s22  ;;  %495 = vrot.lane.b32.xlu0 %v964_v2, %s901_s22 }
  0x57   :  { %220 = vrot.lane.b32.xlu1 %v46_v1, %s903_s23  ;;  %218 = vrot.lane.b32.xlu0 %v957_v0, %s903_s23 }
  0x5b   :  { %472 = vrot.lane.b32.xlu1 %v308_v3, %s903_s23  ;;  %470 = vrot.lane.b32.xlu0 %v964_v2, %s903_s23 }
  0x5f   :  { %280 = vrot.lane.b32.xlu1 %v46_v1, %s904_s24  ;;  %278 = vrot.lane.b32.xlu0 %v957_v0, %s904_s24 }
  0x63   :  { %528 = vrot.lane.b32.xlu1 %v308_v3, %s904_s24  ;;  %526 = vrot.lane.b32.xlu0 %v964_v2, %s904_s24  ;;  %v62_v2 = vrot.slane %v57_v55, %v973_v6  ;;  %v66_v3 = vrot.slane %v57_v55, %v975_v7 }
  0x67   :  { %587 = vperm.xlu0 %817, %v584_v21  }
  0x99   :  { %v137_v24 = vpop.permute.xlu1 %136  ;;  %v77_v25 = vpop.permute.xlu0 %76 }
  0x9d   :  { %v338_v30 = vpop.permute.xlu1 %337  ;;  %v74_v31 = vpop.permute.xlu0 %73 }
  0x9e   :  { %v79_v32 = vsel %vm78_vm0, %v77_v25, %v74_v31  ;;  %v82_v33 = vsel %vm78_vm0, %v74_v31, %v77_v25  ;;  %v323_v25 = vrot.slane %v318_v17, %v973_v6 }
  0x9f   :  { %v96_v37 = vmul.f32 %v89_v26, %v82_v33  ;;  %v97_v38 = vmul.f32 %v93_v27, %v79_v32  ;;  %v327_v26 = vrot.slane %v318_v17, %v975_v7  ;;  %v768_v27 = vld [vmem:[%s1142_s3 + $0x4] sm:$0x3] }
  0xa1   :  { %v100_v41 = vrot.slane %v96_v37, 4  ;;  %v101_v42 = vrot.slane %v97_v38, 4  ;;  %v134_v43 = vpop.permute.xlu1 %133  ;;  %v335_v44 = vpop.permute.xlu0 %334 }
  0xa2   :  { %v139_v47 = vsel %vm138_vm1, %v137_v24, %v134_v43  ;;  %v142_v48 = vsel %vm138_vm1, %v134_v43, %v137_v24  ;;  %v339_v49 = vsel %vm78_vm0, %v338_v30, %v335_v44  ;;  %v342_v50 = vsel %vm78_vm0, %v335_v44, %v338_v30 }
  0xa3   :  { %104 = vst [vmem:[#allocation2] sm:$0xf0] %v100_v41  ;;  %105 = vst [vmem:[#allocation2 + $0x8] sm:$0xf0] %v101_v42  ;;  %v156_v51 = vmul.f32 %v149_v34, %v142_v48  ;;  %v157_v52 = vmul.f32 %v153_v35, %v139_v47  ;;  %v355_v53 = vmul.f32 %v348_v39, %v342_v50 }
  0xa4   :  { %v356_v54 = vmul.f32 %v352_v40, %v339_v49  ;;  %v379_v34 = vrot.slane %v768_v27, %v973_v6  ;;  %v383_v35 = vrot.slane %v768_v27, %v975_v7  ;;  %v201_v43 = vrot.slane %v763_v36, %v973_v6  ;;  %v764_v27 = vld [vmem:[%s1142_s3 + $0xc] sm:$0x3] }
  0xa5   :  { %v160_v56 = vrot.slane %v156_v51, 4  ;;  %v161_v57 = vrot.slane %v157_v52, 4  ;;  %v359_v58 = vrot.slane %v355_v53, 4  ;;  %v394_v60 = vpop.permute.xlu1 %393  ;;  %v391_v61 = vpop.permute.xlu0 %390  ;;  %v205_v44 = vrot.slane %v763_v36, %v975_v7 }
  0xa6   :  { %v360_v59 = vrot.slane %v356_v54, 4  ;;  %v395_v62 = vsel %vm138_vm1, %v394_v60, %v391_v61  ;;  %v398_v63 = vsel %vm138_vm1, %v391_v61, %v394_v60  ;;  %v771_v60 = vld [vmem:[%s1142_s3 + $0xa] sm:$0x3]  ;;  %v234_v36 = vrot.slane %v764_v27, %v973_v6 }
  0xa7   :  { %164 = vst [vmem:[#allocation2 + $0x20] sm:$0xf0] %v160_v56  ;;  %165 = vst [vmem:[#allocation2 + $0x28] sm:$0xf0] %v161_v57  ;;  %v411_v0 = vmul.f32 %v404_v45, %v398_v63  ;;  %v412_v1 = vmul.f32 %v408_v46, %v395_v62  ;;  %v765_v46 = vld [vmem:[%s1142_s3 + $0xe] sm:$0x3] }
  0xa8   :  { %363 = vst [vmem:[#allocation2 + $0x10] sm:$0xf0] %v359_v58  ;;  %364 = vst [vmem:[#allocation2 + $0x18] sm:$0xf0] %v360_v59  ;;  %v261_v58 = vrot.slane %v765_v46, %v973_v6  ;;  %v265_v59 = vrot.slane %v765_v46, %v975_v7 }
  0xa9   :  { %v415_v5 = vrot.slane %v411_v0, 4  ;;  %v416_v8 = vrot.slane %v412_v1, 4  ;;  %v51_v9 = vpop.permute.xlu1 %50  ;;  %v48_v10 = vpop.permute.xlu0 %47 }
  0xaa   :  { %v53_v11 = vsel %vm52_vm2, %v51_v9, %v48_v10  ;;  %v56_v12 = vsel %vm52_vm2, %v48_v10, %v51_v9  ;;  %v773_v10 = vld [vmem:[%s1142_s3 + $0xe] sm:$0x3] }
  0xab   :  { %419 = vst [vmem:[#allocation2 + $0x30] sm:$0xf0] %v415_v5  ;;  %420 = vst [vmem:[#allocation2 + $0x38] sm:$0xf0] %v416_v8  ;;  %v69_v13 = vmul.f32 %v62_v2, %v56_v12  ;;  %v70_v14 = vmul.f32 %v66_v3, %v53_v11  ;;  %v453_v5 = vrot.slane %v771_v60, %v973_v6 }
  0xac   :  { %v457_v8 = vrot.slane %v771_v60, %v975_v7 }
  0xad   :  { %71 = vst [vmem:[#allocation2] sm:$0xf] %v69_v13  ;;  %72 = vst [vmem:[#allocation2 + $0x8] sm:$0xf] %v70_v14  ;;  %v110_v18 = vpop.permute.xlu1 %109  ;;  %v107_v19 = vpop.permute.xlu0 %106 }
  0xae   :  { %v112_v21 = vsel %vm111_vm3, %v110_v18, %v107_v19  ;;  %v115_v22 = vsel %vm111_vm3, %v107_v19, %v110_v18 }
  0xaf   :  { %v129_v23 = vmul.f32 %v122_v15, %v115_v22  ;;  %v130_v24 = vmul.f32 %v126_v16, %v112_v21 }
  0xb1   :  { %131 = vst [vmem:[#allocation2 + $0x20] sm:$0xf] %v129_v23  ;;  %132 = vst [vmem:[#allocation2 + $0x28] sm:$0xf] %v130_v24  ;;  %v313_v28 = vpop.permute.xlu1 %312  ;;  %v310_v29 = vpop.permute.xlu0 %309 }
  0xb2   :  { %v314_v30 = vsel %vm52_vm2, %v313_v28, %v310_v29  ;;  %v317_v31 = vsel %vm52_vm2, %v310_v29, %v313_v28 }
  0xb3   :  { %v330_v32 = vmul.f32 %v323_v25, %v317_v31  ;;  %v331_v33 = vmul.f32 %v327_v26, %v314_v30  ;;  %v509_v25 = vrot.slane %v773_v10, %v973_v6  ;;  %v513_v26 = vrot.slane %v773_v10, %v975_v7 }
  0xb4   :  { %v561_v45 = vld [vmem:[#allocation2 + $0x8] sm:$0xff]  ;;  %v560_v48 = vld [vmem:[#allocation2] sm:$0xff] }
  0xb5   :  { %332 = vst [vmem:[#allocation2 + $0x10] sm:$0xf] %v330_v32  ;;  %333 = vst [vmem:[#allocation2 + $0x18] sm:$0xf] %v331_v33  ;;  %v369_v37 = vpop.permute.xlu1 %368  ;;  %v366_v38 = vpop.permute.xlu0 %365 }
  0xb6   :  { %v370_v39 = vsel %vm111_vm3, %v369_v37, %v366_v38  ;;  %v373_v40 = vsel %vm111_vm3, %v366_v38, %v369_v37  ;;  %v238_v37 = vrot.slane %v764_v27, %v975_v7  ;;  %v772_v38 = vld [vmem:[%s1142_s3 + $0xc] sm:$0x3] }
  0xb7   :  { %v386_v41 = vmul.f32 %v379_v34, %v373_v40  ;;  %v387_v42 = vmul.f32 %v383_v35, %v370_v39 }
  0xb8   :  { %v565_v47 = vld [vmem:[#allocation2 + $0x28] sm:$0xff]  ;;  %v564_v49 = vld [vmem:[#allocation2 + $0x20] sm:$0xff] }
  0xb9   :  { %388 = vst [vmem:[#allocation2 + $0x30] sm:$0xf] %v386_v41  ;;  %389 = vst [vmem:[#allocation2 + $0x38] sm:$0xf] %v387_v42  ;;  %v188_v50 = vpop.permute.xlu1 %187  ;;  %v186_v51 = vpop.permute.xlu0 %185  ;;  %v777_v52 = vpack.c.bf16 %v565_v47, %v561_v45  ;;  %v779_v53 = vpack.c.bf16 %v564_v49, %v560_v48  ;;  %v484_v47 = vrot.slane %v772_v38, %v973_v6  ;;  %v766_v49 = vld [vmem:[%s1142_s3 + $0x10] sm:$0x3] }
  0xba   :  { %v190_v54 = vsel %vm189_vm4, %v186_v51, %v188_v50  ;;  %v194_v55 = vsel %vm189_vm4, %v188_v50, %v186_v51  ;;  %v488_v48 = vrot.slane %v772_v38, %v975_v7 }
  0xbb   :  { %v208_v56 = vmul.f32 %v201_v43, %v190_v54  ;;  %v209_v57 = vmul.f32 %v205_v44, %v194_v55  ;;  %778 = vmatprep.subr.bf16.mxu0 %v777_v52 }
  0xbc   :  { %780 = vmatpush1.bf16.msra.mxu0 %v779_v53  ;;  %v563_v9 = vld [vmem:[#allocation2 + $0x18] sm:$0xff]  ;;  %v562_v12 = vld [vmem:[#allocation2 + $0x10] sm:$0xff] }
  0xbd   :  { %v212_v61 = vrot.slane %v208_v56, 4  ;;  %v213_v62 = vrot.slane %v209_v57, 4  ;;  %v248_v63 = vpop.permute.xlu1 %247  ;;  %v246_v0 = vpop.permute.xlu0 %245  ;;  %v294_v56 = vrot.slane %v766_v49, %v973_v6  ;;  %v298_v57 = vrot.slane %v766_v49, %v975_v7 }
  0xbe   :  { %v250_v1 = vsel %vm249_vm5, %v246_v0, %v248_v63  ;;  %v254_v2 = vsel %vm249_vm5, %v248_v63, %v246_v0 }
  0xbf   :  { %216 = vst [vmem:[#allocation2 + $0x40] sm:$0xf0] %v212_v61  ;;  %217 = vst [vmem:[#allocation2 + $0x48] sm:$0xf0] %v213_v62  ;;  %v268_v3 = vmul.f32 %v261_v58, %v250_v1  ;;  %v269_v4 = vmul.f32 %v265_v59, %v254_v2  ;;  %v774_v58 = vld [vmem:[%s1142_s3 + $0x10] sm:$0x3] }
  0xc0   :  { %v567_v11 = vld [vmem:[#allocation2 + $0x38] sm:$0xff]  ;;  %v566_v13 = vld [vmem:[#allocation2 + $0x30] sm:$0xff]  ;;  %v540_v1 = vrot.slane %v774_v58, %v973_v6  ;;  %v544_v2 = vrot.slane %v774_v58, %v975_v7  ;;  %s906_s3 = smov [#allocation8]  }
  0xc1   :  { %v272_v14 = vrot.slane %v268_v3, 4  ;;  %v273_v15 = vrot.slane %v269_v4, 4  ;;  %v442_v16 = vpop.permute.xlu1 %441  ;;  %v440_v17 = vpop.permute.xlu0 %439  ;;  %v789_v18 = vpack.c.bf16 %v567_v11, %v563_v9  ;;  %v791_v19 = vpack.c.bf16 %v566_v13, %v562_v12  ;;  %s746_s5 = sshll.u32 %s906_s3, 4  ;;  %s747_s5 = int_to_ptr.vmem [resolvable:$true] %s746_s5 }
  0xc2   :  { %v443_v21 = vsel %vm189_vm4, %v440_v17, %v442_v16  ;;  %v447_v22 = vsel %vm189_vm4, %v442_v16, %v440_v17  ;;  %s864_s2 = scalar_lea.vmem %s747_s5, 512  ;;  %p869_p3 = scmp.lt.s32.totalorder %s747_s5, %s747_s5 }
  0xc3   :  { %276 = vst [vmem:[#allocation2 + $0x60] sm:$0xf0] %v272_v14  ;;  %277 = vst [vmem:[#allocation2 + $0x68] sm:$0xf0] %v273_v15  ;;  %v460_v23 = vmul.f32 %v453_v5, %v443_v21  ;;  %v461_v24 = vmul.f32 %v457_v8, %v447_v22  ;;  %790 = vmatprep.subr.bf16.mxu1 %v789_v18  ;;  %p865_p2 = scmp.ne.s32.totalorder %s747_s5, %s864_s2  ;;  %p870_p4 = scmp.lt.s32.totalorder %s864_s2, %s864_s2 }
  0xc4   :  { %792 = vmatpush1.bf16.msra.mxu1 %v791_v19 }
  0xc5   :  { %v464_v28 = vrot.slane %v460_v23, 4  ;;  %v465_v29 = vrot.slane %v461_v24, 4  ;;  %v498_v30 = vpop.permute.xlu1 %497  ;;  %v496_v31 = vpop.permute.xlu0 %495  ;;  %p871_p5 = por %p870_p4, %p869_p3 }
  0xc6   :  { %v499_v32 = vsel %vm249_vm5, %v496_v31, %v498_v30  ;;  %v503_v33 = vsel %vm249_vm5, %v498_v30, %v496_v31  ;;  %v569_v3 = vld [vmem:[#allocation2 + $0x48] sm:$0xff]  ;;  %v568_v5 = vld [vmem:[#allocation2 + $0x40] sm:$0xff] }
  0xc7   :  { %468 = vst [vmem:[#allocation2 + $0x50] sm:$0xf0] %v464_v28  ;;  %469 = vst [vmem:[#allocation2 + $0x58] sm:$0xf0] %v465_v29  ;;  %v516_v34 = vmul.f32 %v509_v25, %v499_v32  ;;  %v517_v35 = vmul.f32 %v513_v26, %v503_v33  ;;  %v559_v28 = vld [vmem:[#allocation6] sm:$0xff]  ;;  %p872_p6 = pnand %p871_p5, %p865_p2 }
  0xc9   :  { %v520_v39 = vrot.slane %v516_v34, 4  ;;  %v521_v40 = vrot.slane %v517_v35, 4  ;;  %v221_v41 = vpop.permute.xlu1 %220  ;;  %v219_v42 = vpop.permute.xlu0 %218 }
  0xca   :  { %v223_v43 = vsel %vm222_vm6, %v219_v42, %v221_v41  ;;  %v227_v44 = vsel %vm222_vm6, %v221_v41, %v219_v42 }
  0xcb   :  { %524 = vst [vmem:[#allocation2 + $0x70] sm:$0xf0] %v520_v39  ;;  %525 = vst [vmem:[#allocation2 + $0x78] sm:$0xf0] %v521_v40  ;;  %v241_v45 = vmul.f32 %v234_v36, %v223_v43  ;;  %v242_v46 = vmul.f32 %v238_v37, %v227_v44 }
  0xcd   :  { %243 = vst [vmem:[#allocation2 + $0x60] sm:$0xf] %v241_v45  ;;  %244 = vst [vmem:[#allocation2 + $0x68] sm:$0xf] %v242_v46  ;;  %v473_v50 = vpop.permute.xlu1 %472  ;;  %v471_v51 = vpop.permute.xlu0 %470 }
  0xce   :  { %v474_v52 = vsel %vm222_vm6, %v471_v51, %v473_v50  ;;  %v478_v53 = vsel %vm222_vm6, %v473_v50, %v471_v51  ;;  %v571_v6 = vld [vmem:[#allocation2 + $0x58] sm:$0xff]  ;;  %v570_v17 = vld [vmem:[#allocation2 + $0x50] sm:$0xff] }
  0xcf   :  { %v491_v54 = vmul.f32 %v484_v47, %v474_v52  ;;  %v492_v55 = vmul.f32 %v488_v48, %v478_v53 }
  0xd1   :  { %493 = vst [vmem:[#allocation2 + $0x70] sm:$0xf] %v491_v54  ;;  %494 = vst [vmem:[#allocation2 + $0x78] sm:$0xf] %v492_v55  ;;  %v281_v59 = vpop.permute.xlu1 %280  ;;  %v279_v60 = vpop.permute.xlu0 %278 }
  0xd2   :  { %v283_v61 = vsel %vm282_vm7, %v279_v60, %v281_v59  ;;  %v287_v62 = vsel %vm282_vm7, %v281_v59, %v279_v60 }
  0xd3   :  { %v301_v63 = vmul.f32 %v294_v56, %v283_v61  ;;  %v302_v0 = vmul.f32 %v298_v57, %v287_v62 }
  0xd4   :  { %v573_v4 = vld [vmem:[#allocation2 + $0x68] sm:$0xff]  ;;  %v572_v8 = vld [vmem:[#allocation2 + $0x60] sm:$0xff] }
  0xd5   :  { %303 = vst [vmem:[#allocation2 + $0x80] sm:$0xf] %v301_v63  ;;  %304 = vst [vmem:[#allocation2 + $0x88] sm:$0xf] %v302_v0  ;;  %v529_v9 = vpop.permute.xlu1 %528  ;;  %v527_v10 = vpop.permute.xlu0 %526  ;;  %v781_v11 = vpack.c.bf16 %v573_v4, %v569_v3  ;;  %v783_v12 = vpack.c.bf16 %v572_v8, %v568_v5 }
  0xd6   :  { %v530_v13 = vsel %vm282_vm7, %v527_v10, %v529_v9  ;;  %v534_v14 = vsel %vm282_vm7, %v529_v9, %v527_v10 }
  0xd7   :  { %v547_v15 = vmul.f32 %v540_v1, %v530_v13  ;;  %v548_v16 = vmul.f32 %v544_v2, %v534_v14  ;;  %782 = vmatprep.subr.bf16.mxu0 %v781_v11 }
  0xd8   :  { %784 = vmatpush1.bf16.msra.mxu0 %v783_v12  ;;  %v575_v7 = vld [vmem:[#allocation2 + $0x78] sm:$0xff]  ;;  %v574_v18 = vld [vmem:[#allocation2 + $0x70] sm:$0xff] }
  0xd9   :  { %549 = vst [vmem:[#allocation2 + $0x90] sm:$0xf] %v547_v15  ;;  %550 = vst [vmem:[#allocation2 + $0x98] sm:$0xf] %v548_v16  ;;  %v793_v19 = vpack.c.bf16 %v575_v7, %v571_v6  ;;  %v795_v21 = vpack.c.bf16 %v574_v18, %v570_v17 }
  0xdb   :  { %794 = vmatprep.subr.bf16.mxu1 %v793_v19 }
  0xdc   :  { %796 = vmatpush1.bf16.msra.mxu1 %v795_v21  ;;  %v577_v22 = vld [vmem:[#allocation2 + $0x88] sm:$0xff]  ;;  %v576_v23 = vld [vmem:[#allocation2 + $0x80] sm:$0xff] }
  0xdd   :  { %v785_v24 = vpack.c.bf16 %v902_v20, %v577_v22  ;;  %v787_v25 = vpack.c.bf16 %v902_v20, %v576_v23 }
  0xdf   :  { %786 = vmatprep.subr.bf16.mxu0 %v785_v24 }
  0xe0   :  { %788 = vmatpush1.bf16.msra.mxu0 %v787_v25  ;;  %v579_v26 = vld [vmem:[#allocation2 + $0x98] sm:$0xff]  ;;  %v578_v27 = vld [vmem:[#allocation2 + $0x90] sm:$0xff] }
  0xe1   :  { %v797_v29 = vpack.c.bf16 %v902_v20, %v579_v26  ;;  %v799_v30 = vpack.c.bf16 %v902_v20, %v578_v27 }
  0xe3   :  { %798 = vmatprep.subr.bf16.mxu1 %v797_v29  ;;  %775 = vmatmul.mubr.msk.f32.vlgmr.msra.gmra.mrb[0].mxu0 %vm590_vm8, %v559_v28 }
  0xe4   :  { %800 = vmatpush1.bf16.msra.mxu1 %v799_v30 }
  0xe6   :  { %v588_v31 = vpop.permute.xlu0 %587 }
  0xe7   :  { %776 = vmatmul.mubr.msk.f32.vlgmr.msra.gmra.mrb[0].mxu1 %vm590_vm8, %v559_v28 }
 0x1b6   :  { %v660_v32 = vpop.f32.mrb[0].mxu0 }
 0x1b7   :  { %v662_v33 = vpop.f32.mrb[1].mxu0  ;;  %v661_v34 = vadd.f32 %v660_v32, %v588_v31 }
 0x1b8   :  { %v663_v35 = vadd.f32 %v662_v33, %v588_v31 }
 0x1b9   :  { %736 = vst [vmem:[#allocation8] sm:$0xff] %v661_v34 }
 0x1ba   :  { %v731_v36 = vpop.f32.mrb[0].mxu1  ;;  %737 = vst [vmem:[#allocation8 + $0x8] sm:$0xff] %v663_v35 }
 0x1bb   :  { %v732_v37 = vadd.f32 %v731_v36, %v588_v31  ;;  %v733_v38 = vpop.f32.mrb[1].mxu1 }
 0x1bc   :  { %v734_v39 = vadd.f32 %v733_v38, %v588_v31 }
 0x1bd   :  { %739 = vst [vmem:[#allocation8 + $0x10] sm:$0xff] %v732_v37 }
 0x1be   :  { %740 = vst [vmem:[#allocation8 + $0x18] sm:$0xff] %v734_v39 }
 0x1bf   :  { %875 = shalt.err (!%p872_p6)
}
 0x1c0   :  { %s876_s8 = scalar_lea.hbm %s1143_s4, 512 }
 0x1c1   :  { %p877_p7 = scmp.ne.s32.totalorder %s1143_s4, %s876_s8  ;;  %p880_p8 = scmp.lt.u32.totalorder %s876_s8, %s1143_s4 }
 0x1c3   :  { %p882_p9 = pnand %p880_p8, %p877_p7 }
 0x1c5   :  { %885 = shalt.err (!%p882_p9)
}
 0x1c6   :  { %s907_s0 = smov 256  }
 0x1c7   :  { %752 = dma.vmem_to_hbm [thread:$0]  %s747_s5, 512, %s1143_s4, [#allocation5], %s907_s0, %s907_s0, %s897_s15  }
 0x1c8   :  { %890 = dma.done.wait [#allocation5], 512  }
 0x1c9   :  { %891 = vsyncadd [#allocation5], 4294966784 }
 0x1ca   :  { %756 = vsyncpa [#allocation4], 1 }
 0x1cb   :  { %757 = vsyncpa [#allocation7], 1 }
 0x1cc   :  { %758 = vsyncpa [#allocation5], 1 }

</bundles_post_ra>
